<compile_context>
chip_gen: v7x
topology: tpu7x:2x2x1
jax: 0.10.0
libtpu: 0.0.40
codegen_flags: <defaults>
</compile_context>

<pallas_src>
import jax
import jax.numpy as jnp
from jax.experimental import pallas as pl
from jax.experimental.pallas import tpu as pltpu


# --------------------------------------------------------------------------- #
# Parameter packing (done once, outside the kernel)                            #
# --------------------------------------------------------------------------- #
def pack_critic_params(params):
    """Pack the 12 per-layer tensors into a single (R, 2H) f32 blob.

    Row layout (D = obs_dim + action_dim, H2 = 2 * hidden_dim):
      [0        : obs_dim )  : W1 rows for obs features      (fused cols: [w1 | w4])
      [obs_dim  : D       )  : W1 rows for action features
      [D        : D+H2    )  : block-diag(w2, w5)
      [D+H2     : D+2*H2  )  : block-diag(w3, w6), zero-padded to H2 columns
      [D+2*H2   : +1      )  : fused bias 1  [b1 | b4]
      [D+2*H2+1 : +1      )  : fused bias 2  [b2 | b5]
      [D+2*H2+2 : +1      )  : fused bias 3  [b3, b6, 0, ...]
      (zero rows to pad total row count to a multiple of 8)
    """
    H = params["w1"].shape[1]
    H2 = 2 * H
    D = params["w1"].shape[0]

    w1f = jnp.concatenate([params["w1"], params["w4"]], axis=1)          # (D, 2H)

    w2f = jnp.zeros((H2, H2), jnp.float32)
    w2f = w2f.at[:H, :H].set(params["w2"]).at[H:, H:].set(params["w5"])  # (2H, 2H)

    w3f = jnp.zeros((H2, H2), jnp.float32)
    w3f = w3f.at[:H, 0:1].set(params["w3"]).at[H:, 1:2].set(params["w6"])

    b1f = jnp.concatenate([params["b1"], params["b4"]], axis=1)          # (1, 2H)
    b2f = jnp.concatenate([params["b2"], params["b5"]], axis=1)          # (1, 2H)
    b3f = jnp.zeros((1, H2), jnp.float32)
    b3f = b3f.at[0, 0].set(params["b3"][0, 0]).at[0, 1].set(params["b6"][0, 0])

    blob = jnp.concatenate([w1f, w2f, w3f, b1f, b2f, b3f], axis=0)
    rows = blob.shape[0]
    rows_pad = -(-rows // 8) * 8
    if rows_pad != rows:
        blob = jnp.concatenate(
            [blob, jnp.zeros((rows_pad - rows, H2), jnp.float32)], axis=0)
    return blob.astype(jnp.float32)


# --------------------------------------------------------------------------- #
# Kernel + wrapper                                                             #
# --------------------------------------------------------------------------- #
def _make_kernel(obs_dim, action_dim, H2):
    D = obs_dim + action_dim

    def kernel(obs_ref, act_ref, w_ref, q_ref):
        obs = obs_ref[...]
        act = act_ref[...]

        # Static slices of the packed, VMEM-resident parameter blob.
        w1_obs = w_ref[0:obs_dim, :]
        w1_act = w_ref[obs_dim:D, :]
        w2 = w_ref[D:D + H2, :]
        w3 = w_ref[D + H2:D + 2 * H2, :]
        b1 = w_ref[D + 2 * H2 + 0:D + 2 * H2 + 1, :]
        b2 = w_ref[D + 2 * H2 + 1:D + 2 * H2 + 2, :]
        b3 = w_ref[D + 2 * H2 + 2:D + 2 * H2 + 3, :]

        # Layer 1 (both heads at once, concat folded into two dots).
        h = jnp.dot(obs, w1_obs, preferred_element_type=jnp.float32)
        h = h + jnp.dot(act, w1_act, preferred_element_type=jnp.float32) + b1
        h = jnp.maximum(h, 0.0)

        # Layer 2 (block-diagonal -> both heads in one dot).
        h = jnp.dot(h, w2, preferred_element_type=jnp.float32) + b2
        h = jnp.maximum(h, 0.0)

        # Layer 3: only columns 0 (q1) and 1 (q2) of w3 are non-zero.
        q = jnp.dot(h, w3, preferred_element_type=jnp.float32) + b3
        q_ref[...] = q[:, 0:2]

    return kernel


def critic_forward(obs, action, packed_params, *, batch_block=512):
    """Pallas equivalent of Critic.forward(obs, action) -> (q1, q2)."""
    B, obs_dim = obs.shape
    action_dim = action.shape[1]
    H2 = packed_params.shape[1]          # 2 * hidden_dim
    kernel = _make_kernel(obs_dim, action_dim, H2)

    obs = obs.astype(jnp.float32)
    action = action.astype(jnp.float32)

    if B <= batch_block:
        # Small batch: single invocation, no grid, full-array VMEM blocks.
        vmem = pl.BlockSpec(memory_space=pltpu.MemorySpace.VMEM)
        q = pl.pallas_call(
            kernel,
            in_specs=[vmem, vmem, vmem],
            out_specs=vmem,
            out_shape=jax.ShapeDtypeStruct((B, 2), jnp.float32),
        )(obs, action, packed_params)
    else:
        # Large batch: tile only the batch axis; weights stay VMEM-resident.
        TB = batch_block
        grid = (pl.cdiv(B, TB),)
        q = pl.pallas_call(
            kernel,
            grid=grid,
            in_specs=[
                pl.BlockSpec((TB, obs_dim), lambda i: (i, 0)),
                pl.BlockSpec((TB, action_dim), lambda i: (i, 0)),
                pl.BlockSpec(packed_params.shape, lambda i: (0, 0)),
            ],
            out_specs=pl.BlockSpec((TB, 2), lambda i: (i, 0)),
            out_shape=jax.ShapeDtypeStruct((B, 2), jnp.float32),
            compiler_params=pltpu.CompilerParams(
                dimension_semantics=("parallel",)),
        )(obs, action, packed_params)

    return q[:, 0:1], q[:, 1:2]


# --------------------------------------------------------------------------- #
# Init + plain-JAX reference                                                   #
# --------------------------------------------------------------------------- #
def init_critic_params(key, obs_dim, action_dim, hidden_dim=32):
    """PyTorch-style uniform(+-1/sqrt(fan_in)) init, weights stored (in, out)."""
    D = obs_dim + action_dim
    layer_dims = [
        (D, hidden_dim),           # fc1
        (hidden_dim, hidden_dim),  # fc2
        (hidden_dim, 1),           # fc3
        (D, hidden_dim),           # fc4
        (hidden_dim, hidden_dim),  # fc5
        (hidden_dim, 1),           # fc6
    ]
    params = {}
    keys = jax.random.split(key, 2 * len(layer_dims))
    for i, (fan_in, fan_out) in enumerate(layer_dims):
        bound = 1.0 / jnp.sqrt(jnp.float32(fan_in))
        params[f"w{i + 1}"] = jax.random.uniform(
            keys[2 * i], (fan_in, fan_out), jnp.float32, -bound, bound)
        params[f"b{i + 1}"] = jax.random.uniform(
            keys[2 * i + 1], (1, fan_out), jnp.float32, -bound, bound)
    return params


def critic_forward_ref(obs, action, params):
    """Plain-JAX reference (matches the PyTorch module)."""
    sa = jnp.concatenate([obs, action], axis=1)
    h = jax.nn.relu(sa @ params["w1"] + params["b1"])
    h = jax.nn.relu(h @ params["w2"] + params["b2"])
    q1 = h @ params["w3"] + params["b3"]
    g = jax.nn.relu(sa @ params["w4"] + params["b4"])
    g = jax.nn.relu(g @ params["w5"] + params["b5"])
    q2 = g @ params["w6"] + params["b6"]
    return q1, q2


# --------------------------------------------------------------------------- #
# Test                                                                         #
# --------------------------------------------------------------------------- #
if __name__ == "__main__":
    obs_dim, action_dim, hidden_dim = 16, 8, 32
    batch = 2

    key = jax.random.PRNGKey(0)
    k_obs, k_act, k_par, k_obs2, k_act2 = jax.random.split(key, 5)
    obs = jax.random.normal(k_obs, (batch, obs_dim), jnp.float32)
    action = jax.random.normal(k_act, (batch, action_dim), jnp.float32)
    params = init_critic_params(k_par, obs_dim, action_dim, hidden_dim)
    packed = pack_critic_params(params)

    # Small-batch (no-grid) path.
    q1, q2 = critic_forward(obs, action, packed)
    q1 = jax.block_until_ready(q1)
    q2 = jax.block_until_ready(q2)
    q1_ref, q2_ref = critic_forward_ref(obs, action, params)
    assert q1.shape == (batch, 1) and q2.shape == (batch, 1)
    assert jnp.allclose(q1, q1_ref, atol=1e-5, rtol=1e-5)
    assert jnp.allclose(q2, q2_ref, atol=1e-5, rtol=1e-5)

    # Large-batch (batch-tiled, "parallel") path.
    big_b = 1024
    obs_b = jax.random.normal(k_obs2, (big_b, obs_dim), jnp.float32)
    act_b = jax.random.normal(k_act2, (big_b, action_dim), jnp.float32)
    q1b, q2b = critic_forward(obs_b, act_b, packed, batch_block=512)
    q1b = jax.block_until_ready(q1b)
    q2b = jax.block_until_ready(q2b)
    q1b_ref, q2b_ref = critic_forward_ref(obs_b, act_b, params)
    assert jnp.allclose(q1b, q1b_ref, atol=1e-4, rtol=1e-4)
    assert jnp.allclose(q2b, q2b_ref, atol=1e-4, rtol=1e-4)

    print("KERNEL_OK")
</pallas_src>

<mosaic_0001>
module attributes {stable_mosaic.version = 11 : i64} {
  func.func @kernel(%arg0: memref<2x16xf32, #tpu.memory_space<vmem>>, %arg1: memref<2x8xf32, #tpu.memory_space<vmem>>, %arg2: memref<160x64xf32, #tpu.memory_space<vmem>>, %arg3: memref<2x2xf32, #tpu.memory_space<vmem>>) attributes {dimension_semantics = [], scalar_prefetch = 0 : i64, scratch_operands = 0 : i64, tpu.core_type = #tpu.core_type<tc>} {
    %c0 = arith.constant 0 : index
    %c0_0 = arith.constant 0 : index
    %0 = vector.load %arg0[%c0, %c0_0] : memref<2x16xf32, #tpu.memory_space<vmem>>, vector<2x16xf32>
    %c0_1 = arith.constant 0 : index
    %c0_2 = arith.constant 0 : index
    %1 = vector.load %arg1[%c0_1, %c0_2] : memref<2x8xf32, #tpu.memory_space<vmem>>, vector<2x8xf32>
    %c0_3 = arith.constant 0 : index
    %c0_4 = arith.constant 0 : index
    %2 = vector.load %arg2[%c0_3, %c0_4] : memref<160x64xf32, #tpu.memory_space<vmem>>, vector<16x64xf32>
    %c16 = arith.constant 16 : index
    %c0_5 = arith.constant 0 : index
    %3 = vector.load %arg2[%c16, %c0_5] : memref<160x64xf32, #tpu.memory_space<vmem>>, vector<8x64xf32>
    %c24 = arith.constant 24 : index
    %c0_6 = arith.constant 0 : index
    %4 = vector.load %arg2[%c24, %c0_6] : memref<160x64xf32, #tpu.memory_space<vmem>>, vector<64x64xf32>
    %c88 = arith.constant 88 : index
    %c0_7 = arith.constant 0 : index
    %5 = vector.load %arg2[%c88, %c0_7] : memref<160x64xf32, #tpu.memory_space<vmem>>, vector<64x64xf32>
    %c152 = arith.constant 152 : index
    %c0_8 = arith.constant 0 : index
    %6 = vector.load %arg2[%c152, %c0_8] : memref<160x64xf32, #tpu.memory_space<vmem>>, vector<1x64xf32>
    %c153 = arith.constant 153 : index
    %c0_9 = arith.constant 0 : index
    %7 = vector.load %arg2[%c153, %c0_9] : memref<160x64xf32, #tpu.memory_space<vmem>>, vector<1x64xf32>
    %c154 = arith.constant 154 : index
    %c0_10 = arith.constant 0 : index
    %8 = vector.load %arg2[%c154, %c0_10] : memref<160x64xf32, #tpu.memory_space<vmem>>, vector<1x64xf32>
    %cst = arith.constant dense<0.000000e+00> : vector<2x64xf32>
    %9 = tpu.matmul %0, %2, %cst {dimension_numbers = #tpu.dot_dimension_numbers<[1], [0], [0], [1], [0, 0, 1, 1], [], []>} : vector<2x16xf32>, vector<16x64xf32>, vector<2x64xf32> -> vector<2x64xf32>
    %cst_11 = arith.constant dense<0.000000e+00> : vector<2x64xf32>
    %10 = tpu.matmul %1, %3, %cst_11 {dimension_numbers = #tpu.dot_dimension_numbers<[1], [0], [0], [1], [0, 0, 1, 1], [], []>} : vector<2x8xf32>, vector<8x64xf32>, vector<2x64xf32> -> vector<2x64xf32>
    %11 = arith.addf %9, %10 : vector<2x64xf32>
    %12 = vector.broadcast %6 : vector<1x64xf32> to vector<2x64xf32>
    %13 = arith.addf %11, %12 : vector<2x64xf32>
    %cst_12 = arith.constant 0.000000e+00 : f32
    %14 = vector.broadcast %cst_12 : f32 to vector<2x64xf32>
    %15 = arith.maximumf %13, %14 : vector<2x64xf32>
    %cst_13 = arith.constant dense<0.000000e+00> : vector<2x64xf32>
    %16 = tpu.matmul %15, %4, %cst_13 {dimension_numbers = #tpu.dot_dimension_numbers<[1], [0], [0], [1], [0, 0, 1, 1], [], []>} : vector<2x64xf32>, vector<64x64xf32>, vector<2x64xf32> -> vector<2x64xf32>
    %17 = vector.broadcast %7 : vector<1x64xf32> to vector<2x64xf32>
    %18 = arith.addf %16, %17 : vector<2x64xf32>
    %cst_14 = arith.constant 0.000000e+00 : f32
    %19 = vector.broadcast %cst_14 : f32 to vector<2x64xf32>
    %20 = arith.maximumf %18, %19 : vector<2x64xf32>
    %cst_15 = arith.constant dense<0.000000e+00> : vector<2x64xf32>
    %21 = tpu.matmul %20, %5, %cst_15 {dimension_numbers = #tpu.dot_dimension_numbers<[1], [0], [0], [1], [0, 0, 1, 1], [], []>} : vector<2x64xf32>, vector<64x64xf32>, vector<2x64xf32> -> vector<2x64xf32>
    %22 = vector.broadcast %8 : vector<1x64xf32> to vector<2x64xf32>
    %23 = arith.addf %21, %22 : vector<2x64xf32>
    %24 = vector.extract_strided_slice %23 {offsets = [0, 0], sizes = [2, 2], strides = [1, 1]} : vector<2x64xf32> to vector<2x2xf32>
    %c0_16 = arith.constant 0 : index
    %c0_17 = arith.constant 0 : index
    %25 = vector.load %arg3[%c0_16, %c0_17] : memref<2x2xf32, #tpu.memory_space<vmem>>, vector<2x2xf32>
    tpu.vector_store %arg3[%c0_16, %c0_17], %24 {strides = array<i32>} : memref<2x2xf32, #tpu.memory_space<vmem>>, vector<2x2xf32>,
    return
  }
}

</mosaic_0001>

<bundles_post_ra>
// kernel: tpu_custom_call.1
= control target key start
LH: loop header
LB: loop body
LE: loop exit
PB: predicated region body
PF: predicated region fallthrough
CT: control target
= control target key end

     0   :  { %v500_v3 = vmov 0.0|0.0   ;;  %v501_v4 = vmov 0.0   ;;  %vm39_vm0 = vcmask 64512   ;;  %vm502_vm1 = vmmov 0   ;;  %s612_s0 = inlined_call_operand.vmem [shape: f32[2,16], index: 0, kind: input, shape index: {}]   ;;  %s613_s1 = inlined_call_operand.vmem [shape: f32[2,8], index: 1, kind: input, shape index: {}]   ;;  %s614_s2 = inlined_call_operand.vmem [shape: f32[160,64], index: 2, kind: input, shape index: {}]   ;;  %s615_s3 = inlined_call_operand.hbm [shape: f32[2,2], index: 3, kind: output, shape index: {}]  }
   0x1   :  { %v17_v0 = vld [vmem:[%s614_s2] sm:$0xff]  ;;  %v18_v1 = vld [vmem:[%s614_s2 + $0x8] sm:$0xff]  ;;  %v19_v2 = vld [vmem:[%s614_s2 + $0x10] sm:$0xff]  ;;  %445 = vmatprep.subr.bf16.mxu1 %v500_v3  ;;  %395 = vmatprep.subr.mxu0 %v501_v4  ;;  %vm113_vm2 = vcmask 130048  }
   0x2   :  { %v446_v5 = vpack.c.bf16 %v18_v1, %v17_v0  ;;  %v16_v6 = vld [vmem:[%s613_s1] sm:$0x3]  ;;  %396 = vmatpush3.msra.mxu0 %v19_v2  ;;  %397 = vmatprep.mubr.msk.f32.mxu0 %vm502_vm1, %v501_v4  ;;  %v20_v7 = vld [vmem:[%s614_s2 + $0x18] sm:$0xff]  ;;  %v22_v9 = vld [vmem:[%s614_s2 + $0x28] sm:$0xff] }
   0x3   :  { %v21_v8 = vld [vmem:[%s614_s2 + $0x20] sm:$0xff]  ;;  %398 = vmatmul.mubr.msk.f32.vlgmr.msra.gmra.mrb[0].mxu0 %vm39_vm0, %v16_v6  ;;  %v23_v12 = vld [vmem:[%s614_s2 + $0x30] sm:$0xff] }
   0x4   :  { %447 = vmatpush3.bf16.msra.mxu1 %v446_v5  ;;  %v15_v10 = vld [vmem:[%s612_s0] sm:$0x3]  ;;  %v449_v11 = vpack.c.bf16 %v21_v8, %v20_v7 }
   0x5   :  { %8 = vsyncpa [#allocation3], 0  ;;  %404 = vmatprep.mubr.msk.f32.mxu1 %vm502_vm1, %v501_v4  ;;  %448 = vmatprep.subr.bf16.mxu0 %v500_v3  ;;  %v452_v13 = vpack.c.bf16 %v23_v12, %v22_v9  ;;  %v24_v14 = vld [vmem:[%s614_s2 + $0x38] sm:$0xff]  ;;  %v25_v15 = vld [vmem:[%s614_s2 + $0x40] sm:$0xff]  ;;  %vm197_vm3 = vcmask 523264   ;;  %s503_s29 = smov [#allocation2]  }
   0x6   :  { %450 = vmatpush3.bf16.msra.mxu0 %v449_v11  ;;  %423 = vmatprep.mubr.msk.f32.mxu0 %vm502_vm1, %v501_v4  ;;  %v455_v16 = vpack.c.bf16 %v25_v15, %v24_v14  ;;  %v26_v17 = vld [vmem:[%s614_s2 + $0x48] sm:$0xff]  ;;  %v27_v18 = vld [vmem:[%s614_s2 + $0x50] sm:$0xff]  ;;  %v28_v20 = vld [vmem:[%s614_s2 + $0x58] sm:$0xff]  ;;  %s357_s30 = sshll.u32 %s503_s29, 4  ;;  %vm349_vm4 = vcmask 9216   ;;  %s358_s30 = int_to_ptr.vmem [resolvable:$true] %s357_s30 }
   0x7   :  { %405 = vmatmul.mubr.msk.f32.vlgmr.msra.gmra.mrb[0].mxu1 %vm113_vm2, %v15_v10  ;;  %451 = vmatprep.subr.bf16.mxu0 %v500_v3  ;;  %v458_v19 = vpack.c.bf16 %v27_v18, %v26_v17  ;;  %v29_v21 = vld [vmem:[%s614_s2 + $0x60] sm:$0xff]  ;;  %v30_v22 = vld [vmem:[%s614_s2 + $0x68] sm:$0xff]  ;;  %v31_v24 = vld [vmem:[%s614_s2 + $0x70] sm:$0xff]  ;;  %s476_s4 = scalar_lea.vmem %s358_s30, 32  ;;  %p481_p1 = scmp.lt.s32.totalorder %s358_s30, %s358_s30 }
   0x8   :  { %460 = vmatprep.subr.bf16.mxu1 %v500_v3  ;;  %442 = vmatprep.mubr.msk.f32.mxu1 %vm502_vm1, %v501_v4  ;;  %v461_v23 = vpack.c.bf16 %v29_v21, %v28_v20  ;;  %v464_v25 = vpack.c.bf16 %v31_v24, %v30_v22  ;;  %v32_v26 = vld [vmem:[%s614_s2 + $0x78] sm:$0xff]  ;;  %v33_v27 = vld [vmem:[%s614_s2 + $0x80] sm:$0xff]  ;;  %v34_v37 = vld [vmem:[%s614_s2 + $0x88] sm:$0xff]  ;;  %p477_p0 = scmp.ne.s32.totalorder %s358_s30, %s476_s4  ;;  %p482_p2 = scmp.lt.s32.totalorder %s476_s4, %s476_s4 }
   0x9   :  { %v467_v28 = vpack.c.bf16 %v33_v27, %v32_v26  ;;  %v367_v31 = vld [vmem:[%s614_s2 + $0x98] ss:$0 sm:$0xff]  ;;  %v35_v38 = vld [vmem:[%s614_s2 + $0x90] sm:$0xff]  ;;  %v368_v40 = vld [vmem:[%s614_s2 + $0x99] ss:$0 sm:$0xff] }
   0xa   :  { %453 = vmatpush3.bf16.msra.mxu0 %v452_v13  ;;  %462 = vmatpush3.bf16.msra.mxu1 %v461_v23  ;;  %v470_v39 = vpack.c.bf16 %v35_v38, %v34_v37  ;;  %v370_v45 = vld [vmem:[%s614_s2 + $0x9a] ss:$0 sm:$0xff]  ;;  %p483_p3 = por %p482_p2, %p481_p1 }
   0xb   :  { %454 = vmatprep.subr.bf16.mxu0 %v500_v3  ;;  %463 = vmatprep.subr.bf16.mxu1 %v500_v3 }
   0xc   :  { %p484_p4 = pnand %p483_p3, %p477_p0 }
   0xe   :  { %456 = vmatpush3.bf16.msra.mxu0 %v455_v16  ;;  %465 = vmatpush3.bf16.msra.mxu1 %v464_v25 }
   0xf   :  { %457 = vmatprep.subr.bf16.mxu0 %v500_v3  ;;  %466 = vmatprep.subr.bf16.mxu1 %v500_v3 }
  0x12   :  { %459 = vmatpush3.bf16.msra.mxu0 %v458_v19  ;;  %468 = vmatpush3.bf16.msra.mxu1 %v467_v28 }
  0x13   :  { %469 = vmatprep.subr.bf16.mxu1 %v500_v3 }
  0x16   :  { %471 = vmatpush3.bf16.msra.mxu1 %v470_v39 }
  0xd6   :  { %v109_v29 = vpop.f32.mrb[0].mxu0 }
  0xd7   :  { %v399_v30 = vpop.f32.mrb[1].mxu0 }
  0xda   :  { %v183_v32 = vpop.f32.mrb[0].mxu1 }
  0xdb   :  { %v184_v33 = vadd.f32 %v183_v32, %v109_v29  ;;  %v406_v34 = vpop.f32.mrb[1].mxu1 }
  0xdd   :  { %v191_v35 = vadd.f32 %v367_v31, %v184_v33 }
  0xdf   :  { %v192_v36 = vmax.f32 %v191_v35, 0.0 }
  0xe1   :  { %424 = vmatmul.mubr.msk.f32.vlgmr.msra.gmra.mrb[2].mxu0 %vm197_vm3, %v192_v36 }
 0x1b4   :  { %v267_v41 = vpop.f32.mrb[2].mxu0 }
 0x1b5   :  { %v268_v42 = vadd.f32 %v368_v40, %v267_v41  ;;  %v425_v43 = vpop.f32.mrb[3].mxu0 }
 0x1b7   :  { %v271_v44 = vmax.f32 %v268_v42, 0.0 }
 0x1b9   :  { %443 = vmatmul.mubr.msk.f32.vlgmr.msra.gmra.mrb[2].mxu1 %vm197_vm3, %v271_v44 }
 0x28c   :  { %v345_v46 = vpop.f32.mrb[2].mxu1 }
 0x28d   :  { %v346_v47 = vadd.f32 %v370_v45, %v345_v46  ;;  %v444_v48 = vpop.f32.mrb[3].mxu1 }
 0x28f   :  { %350 = vst.msk [vmem:[#allocation2] sm:$0x3] %vm349_vm4, %v346_v47 }
 0x290   :  { %487 = shalt.err (!%p484_p4)
}
 0x291   :  { %s488_s7 = scalar_lea.hbm %s615_s3, 32 }
 0x292   :  { %p489_p5 = scmp.ne.s32.totalorder %s615_s3, %s488_s7  ;;  %p492_p6 = scmp.lt.u32.totalorder %s488_s7, %s615_s3 }
 0x294   :  { %p494_p7 = pnand %p492_p6, %p489_p5 }
 0x296   :  { %497 = shalt.err (!%p494_p7)
}
 0x297   :  { %360 = dma.vmem_to_hbm [thread:$0]  %s358_s30, 32, %s615_s3, [#allocation3]  }
 0x298   :  { %498 = dma.done.wait [#allocation3], 32  }
 0x299   :  { %499 = vsyncadd [#allocation3], 4294967264 }
 0x29a   :  { %364 = vsyncpa [#allocation3], 1 }

</bundles_post_ra>
